<compile_context>
chip_gen: v6e
topology: v6e:2x2x1
jax: 0.10.0
libtpu: 0.0.40
codegen_flags: <defaults>
</compile_context>

<pallas_src>
import math

import jax
import jax.numpy as jnp
from jax.experimental import pallas as pl
from jax.experimental.pallas import tpu as pltpu

OUT_DIM = 10
OUT_PAD = 128          # lane-dense output width
HIDDEN = 1000
HID_PAD = 1024         # hidden padded to a clean multiple of 128 lanes
PROJ = 60
PROJ_PAD = 128         # projection width padded to 128 lanes (unfolded path)
NEG_INF = -1e30        # padded-logit bias; exp(NEG_INF - m) == 0 in f32
FOLD_D_MAX = 144       # fold wins while D*HID_PAD < D*PROJ_PAD + PROJ_PAD*HID_PAD

_ROW_VMEM_BUDGET = 32 * 1024 * 1024   # budget for row-dependent VMEM live set
_MAX_TM = 4096
_MIN_TM = 256


# ----------------------------- kernels ------------------------------------ #

def _net_kernel_fold(x_ref, w1_ref, b1_ref, w2_ref, b2_ref, o_ref):
    # x_ref:  (TM, D)          f32  flattened input tile (cast to bf16 here)
    # w1_ref: (D, 1024)        bf16 folded weight  (U @ fc1_w.T, zero-padded cols)
    # b1_ref: (1, 1024)        f32  fc1 bias (zero-padded)
    # w2_ref: (1024, 128)      bf16 fc2 weight (zero-padded rows/cols)
    # b2_ref: (1, 128)         f32  fc2 bias, padded cols = -1e30
    # o_ref:  (TM, 128)        log-probabilities (valid cols [:10])
    x = x_ref[...].astype(jnp.bfloat16)

    h = jnp.dot(x, w1_ref[...], preferred_element_type=jnp.float32) + b1_ref[...]
    h = jnp.maximum(h, 0.0).astype(jnp.bfloat16)          # ReLU in f32, bf16 for MXU

    logits = jnp.dot(h, w2_ref[...], preferred_element_type=jnp.float32) + b2_ref[...]

    # numerically stable log_softmax over the 128-wide lane-dense logits.
    # Padded columns carry -1e30 bias -> contribute exp(...) == 0 exactly.
    m = jnp.max(logits, axis=1, keepdims=True)
    shifted = logits - m
    lse = jnp.log(jnp.sum(jnp.exp(shifted), axis=1, keepdims=True))
    o_ref[...] = (shifted - lse).astype(o_ref.dtype)


def _net_kernel_unfold(x_ref, u_ref, w1_ref, b1_ref, w2_ref, b2_ref, o_ref):
    # Two-matmul path for larger D: the (TM, 128)-padded projection stays in VMEM.
    x = x_ref[...].astype(jnp.bfloat16)

    z = jnp.dot(x, u_ref[...], preferred_element_type=jnp.float32)   # (TM, 128)
    z = z.astype(jnp.bfloat16)

    h = jnp.dot(z, w1_ref[...], preferred_element_type=jnp.float32) + b1_ref[...]
    h = jnp.maximum(h, 0.0).astype(jnp.bfloat16)

    logits = jnp.dot(h, w2_ref[...], preferred_element_type=jnp.float32) + b2_ref[...]

    m = jnp.max(logits, axis=1, keepdims=True)
    shifted = logits - m
    lse = jnp.log(jnp.sum(jnp.exp(shifted), axis=1, keepdims=True))
    o_ref[...] = (shifted - lse).astype(o_ref.dtype)


# ------------------------- one-time parameter prep ------------------------ #

def prepare_params(U, w1_t, b1, w2_t, b2, fold=None):
    """One-time preparation (fold / pad / bf16-cast).  Call once, reuse."""
    D = U.shape[0]
    if fold is None:
        fold = D <= FOLD_D_MAX

    b1p = jnp.zeros((1, HID_PAD), jnp.float32).at[0, :HIDDEN].set(
        b1.astype(jnp.float32))
    w2p = jnp.zeros((HID_PAD, OUT_PAD), jnp.float32).at[:HIDDEN, :OUT_DIM].set(
        w2_t.astype(jnp.float32))
    b2p = jnp.full((1, OUT_PAD), NEG_INF, jnp.float32).at[0, :OUT_DIM].set(
        b2.astype(jnp.float32))
    w2_bf = w2p.astype(jnp.bfloat16)

    if fold:
        # No nonlinearity between x@U and fc1 -> exact algebraic fold.
        w1f = jnp.zeros((D, HID_PAD), jnp.float32).at[:, :HIDDEN].set(
            jnp.dot(U.astype(jnp.float32), w1_t.astype(jnp.float32)))
        return ("fold", D, (w1f.astype(jnp.bfloat16), b1p, w2_bf, b2p))

    up = jnp.zeros((D, PROJ_PAD), jnp.float32).at[:, :PROJ].set(
        U.astype(jnp.float32))
    w1p = jnp.zeros((PROJ_PAD, HID_PAD), jnp.float32).at[:PROJ, :HIDDEN].set(
        w1_t.astype(jnp.float32))
    return ("unfold", D, (up.astype(jnp.bfloat16), w1p.astype(jnp.bfloat16),
                          b1p, w2_bf, b2p))


# ------------------------------ tiling math -------------------------------- #

def _round_up(x, m):
    return ((x + m - 1) // m) * m


def _per_row_bytes(D, mode, out_bytes):
    """Conservative estimate of row-dependent VMEM bytes per batch row."""
    b = 2 * D * 4                        # x tile (f32 in), double-buffered
    if mode == "unfold":
        b += PROJ_PAD * (4 + 2)          # projection intermediate f32 + bf16
    b += HID_PAD * (4 + 2)               # hidden activations f32 + bf16
    b += OUT_PAD * 4 * 4                 # logits / shifted / exp / result temporaries
    b += 2 * OUT_PAD * out_bytes         # output tile, double-buffered
    return b


def _choose_tm(N, per_row):
    cap = (_ROW_VMEM_BUDGET // per_row) // 256 * 256
    cap = max(_MIN_TM, min(_MAX_TM, cap))
    # At least 2 grid steps when N > 8 so both v7x TensorCores get rows.
    half = _round_up(max(-(-N // 2), 1), 8)
    return max(8, min(cap, half))


def _vmem_limit(tm, per_row, weight_bytes):
    est = tm * per_row + 2 * weight_bytes + (4 << 20)
    return int(min(max(est, 32 << 20), 64 << 20))


# ------------------------------- forward ----------------------------------- #

def net_forward(x_nchw, params, *, out_dtype=jnp.float32):
    """Forward pass of Net.  `params` comes from prepare_params()."""
    mode, D, weights = params
    N = x_nchw.shape[0]
    assert math.prod(x_nchw.shape[1:]) == D
    x2d = x_nchw.reshape(N, D)           # same as torch .view; no cast / pad here

    out_bytes = jnp.dtype(out_dtype).itemsize
    per_row = _per_row_bytes(D, mode, out_bytes)
    tm = _choose_tm(N, per_row)
    grid = (pl.cdiv(N, tm),)             # ragged last tile handled by edge masking

    def _const(shape):
        return pl.BlockSpec(shape, lambda i: (0, 0))   # VMEM-resident weight

    if mode == "fold":
        kernel = _net_kernel_fold
        w_specs = [_const((D, HID_PAD)), _const((1, HID_PAD)),
                   _const((HID_PAD, OUT_PAD)), _const((1, OUT_PAD))]
        flops_per_row = 2 * (D * HID_PAD + HID_PAD * OUT_PAD)
        weight_bytes = (D * HID_PAD + HID_PAD * OUT_PAD) * 2 + (HID_PAD + OUT_PAD) * 4
    else:
        kernel = _net_kernel_unfold
        w_specs = [_const((D, PROJ_PAD)), _const((PROJ_PAD, HID_PAD)),
                   _const((1, HID_PAD)), _const((HID_PAD, OUT_PAD)),
                   _const((1, OUT_PAD))]
        flops_per_row = 2 * (D * PROJ_PAD + PROJ_PAD * HID_PAD + HID_PAD * OUT_PAD)
        weight_bytes = ((D * PROJ_PAD + PROJ_PAD * HID_PAD + HID_PAD * OUT_PAD) * 2
                        + (HID_PAD + OUT_PAD) * 4)

    cost = pl.CostEstimate(
        flops=int(N) * flops_per_row,
        transcendentals=int(N) * (OUT_PAD + 1),
        bytes_accessed=(int(N) * D * x2d.dtype.itemsize + weight_bytes
                        + int(N) * OUT_PAD * out_bytes))

    out = pl.pallas_call(
        kernel,
        out_shape=jax.ShapeDtypeStruct((N, OUT_PAD), out_dtype),
        grid=grid,
        in_specs=[pl.BlockSpec((tm, D), lambda i: (i, 0))] + w_specs,
        out_specs=pl.BlockSpec((tm, OUT_PAD), lambda i: (i, 0)),
        compiler_params=pltpu.CompilerParams(
            dimension_semantics=("parallel",),
            vmem_limit_bytes=_vmem_limit(tm, per_row, weight_bytes)),
        cost_estimate=cost,
    )(x2d, *weights)

    # Padded cols [10:128] hold garbage (~ -1e30 - lse); slice them away.
    # TODO(synk): downstream consumers that accept the padded (N, 128) slab can
    # skip this slice (and use out_dtype=jnp.bfloat16) to cut HBM writeback.
    return out[:, :OUT_DIM]


# ------------------------------ references --------------------------------- #

def reference_forward_f32(x_nchw, U, w1_t, b1, w2_t, b2):
    """Pure f32 reference mirroring the torch module exactly."""
    N = x_nchw.shape[0]
    x = x_nchw.reshape(N, -1)
    x = x @ U
    x = jnp.maximum(x @ w1_t + b1, 0.0)
    logits = x @ w2_t + b2
    return jax.nn.log_softmax(logits, axis=1)


def reference_forward_bf16_fold(x_nchw, U, w1_t, b1, w2_t, b2):
    """Reference using the same bf16-cast operands the folded kernel sees."""
    N = x_nchw.shape[0]
    x = x_nchw.reshape(N, -1).astype(jnp.bfloat16).astype(jnp.float32)
    w1f = (U @ w1_t).astype(jnp.bfloat16).astype(jnp.float32)
    w2 = w2_t.astype(jnp.bfloat16).astype(jnp.float32)
    h = jnp.maximum(x @ w1f + b1, 0.0)
    h = h.astype(jnp.bfloat16).astype(jnp.float32)
    logits = h @ w2 + b2
    return jax.nn.log_softmax(logits, axis=1)


def reference_forward_bf16_unfold(x_nchw, U, w1_t, b1, w2_t, b2):
    """Reference using the same bf16-cast operands the unfolded kernel sees."""
    N = x_nchw.shape[0]
    x = x_nchw.reshape(N, -1).astype(jnp.bfloat16).astype(jnp.float32)
    ub = U.astype(jnp.bfloat16).astype(jnp.float32)
    z = (x @ ub).astype(jnp.bfloat16).astype(jnp.float32)
    w1 = w1_t.astype(jnp.bfloat16).astype(jnp.float32)
    h = jnp.maximum(z @ w1 + b1, 0.0).astype(jnp.bfloat16).astype(jnp.float32)
    w2 = w2_t.astype(jnp.bfloat16).astype(jnp.float32)
    logits = h @ w2 + b2
    return jax.nn.log_softmax(logits, axis=1)


# --------------------------------- main ------------------------------------ #

if __name__ == "__main__":
    key = jax.random.PRNGKey(0)
    k_x, k_u, k_w1, k_b1, k_w2, k_b2, k_x2 = jax.random.split(key, 7)

    # Small shapes consistent with the module: D = C*H*W = 64 feeds U: (64, 60),
    # which feeds fc1 (60 -> 1000), fc2 (1000 -> 10).
    N, C, H, W = 8, 4, 4, 4
    D = C * H * W  # 64

    x = jax.random.normal(k_x, (N, C, H, W), dtype=jnp.float32)
    U = jax.random.normal(k_u, (D, PROJ), dtype=jnp.float32) * 0.1
    # Parameters stored pre-transposed as (in, out).
    w1_t = jax.random.normal(k_w1, (PROJ, HIDDEN), dtype=jnp.float32) * 0.05
    b1 = jax.random.normal(k_b1, (HIDDEN,), dtype=jnp.float32) * 0.05
    w2_t = jax.random.normal(k_w2, (HIDDEN, OUT_DIM), dtype=jnp.float32) * 0.05
    b2 = jax.random.normal(k_b2, (OUT_DIM,), dtype=jnp.float32) * 0.05

    # One-time parameter prep (hoisted out of the per-call path).
    params_fold = prepare_params(U, w1_t, b1, w2_t, b2)            # D=64 -> fold
    params_unfold = prepare_params(U, w1_t, b1, w2_t, b2, fold=False)

    ref_f32 = reference_forward_f32(x, U, w1_t, b1, w2_t, b2)

    # --- folded (single-matmul-into-hidden) path ---
    out = jax.block_until_ready(net_forward(x, params_fold))
    assert out.shape == (N, OUT_DIM)
    ref_bf = reference_forward_bf16_fold(x, U, w1_t, b1, w2_t, b2)
    assert jnp.allclose(out, ref_bf, atol=2e-3, rtol=2e-3), \
        float(jnp.max(jnp.abs(out - ref_bf)))
    assert jnp.allclose(out, ref_f32, atol=5e-2, rtol=5e-2), \
        float(jnp.max(jnp.abs(out - ref_f32)))

    # --- unfolded (two-matmul) path, same weights ---
    out_u = jax.block_until_ready(net_forward(x, params_unfold))
    ref_bf_u = reference_forward_bf16_unfold(x, U, w1_t, b1, w2_t, b2)
    assert jnp.allclose(out_u, ref_bf_u, atol=1e-2, rtol=1e-2), \
        float(jnp.max(jnp.abs(out_u - ref_bf_u)))
    assert jnp.allclose(out_u, ref_f32, atol=5e-2, rtol=5e-2), \
        float(jnp.max(jnp.abs(out_u - ref_f32)))

    # --- ragged batch (N not a multiple of the row tile): exercises the
    #     edge-masked final block (no wrapper-side jnp.pad pass over x). ---
    N2 = 20
    x2 = jax.random.normal(k_x2, (N2, C, H, W), dtype=jnp.float32)
    out2 = jax.block_until_ready(net_forward(x2, params_fold))
    assert out2.shape == (N2, OUT_DIM)
    ref2 = reference_forward_bf16_fold(x2, U, w1_t, b1, w2_t, b2)
    assert jnp.allclose(out2, ref2, atol=2e-3, rtol=2e-3), \
        float(jnp.max(jnp.abs(out2 - ref2)))

    print("KERNEL_OK")
</pallas_src>

<mosaic_0001>
module attributes {stable_mosaic.version = 11 : i64} {
  func.func @_net_kernel_fold(%arg0: i32, %arg1: memref<8x64xf32, #tpu.memory_space<vmem>>, %arg2: memref<64x1024xbf16, #tpu.memory_space<vmem>>, %arg3: memref<1x1024xf32, #tpu.memory_space<vmem>>, %arg4: memref<1024x128xbf16, #tpu.memory_space<vmem>>, %arg5: memref<1x128xf32, #tpu.memory_space<vmem>>, %arg6: memref<8x128xf32, #tpu.memory_space<vmem>>) attributes {dimension_semantics = [#tpu.dimension_semantics<parallel>], iteration_bounds = array<i64: 1>, scalar_prefetch = 0 : i64, scratch_operands = 0 : i64, tpu.core_type = #tpu.core_type<tc>, window_params = [{transform_indices = @transform_0, window_bounds = array<i64: 8, 64>}, {pipeline_mode = #tpu.pipeline_mode<synchronous>, transform_indices = @transform_1, window_bounds = array<i64: 64, 1024>}, {pipeline_mode = #tpu.pipeline_mode<synchronous>, transform_indices = @transform_2, window_bounds = array<i64: 1, 1024>}, {pipeline_mode = #tpu.pipeline_mode<synchronous>, transform_indices = @transform_3, window_bounds = array<i64: 1024, 128>}, {pipeline_mode = #tpu.pipeline_mode<synchronous>, transform_indices = @transform_4, window_bounds = array<i64: 1, 128>}, {transform_indices = @transform_5, window_bounds = array<i64: 8, 128>}]} {
    %c0 = arith.constant 0 : index
    %c0_0 = arith.constant 0 : index
    %0 = vector.load %arg1[%c0, %c0_0] : memref<8x64xf32, #tpu.memory_space<vmem>>, vector<8x64xf32>
    %1 = arith.truncf %0 : vector<8x64xf32> to vector<8x64xbf16>
    %c0_1 = arith.constant 0 : index
    %c0_2 = arith.constant 0 : index
    %2 = vector.load %arg2[%c0_1, %c0_2] : memref<64x1024xbf16, #tpu.memory_space<vmem>>, vector<64x1024xbf16>
    %cst = arith.constant dense<0.000000e+00> : vector<8x1024xf32>
    %3 = tpu.matmul %1, %2, %cst {dimension_numbers = #tpu.dot_dimension_numbers<[1], [0], [0], [1], [0, 0, 1, 1], [], []>} : vector<8x64xbf16>, vector<64x1024xbf16>, vector<8x1024xf32> -> vector<8x1024xf32>
    %c0_3 = arith.constant 0 : index
    %c0_4 = arith.constant 0 : index
    %4 = vector.load %arg3[%c0_3, %c0_4] : memref<1x1024xf32, #tpu.memory_space<vmem>>, vector<1x1024xf32>
    %5 = vector.broadcast %4 : vector<1x1024xf32> to vector<8x1024xf32>
    %6 = arith.addf %3, %5 : vector<8x1024xf32>
    %cst_5 = arith.constant 0.000000e+00 : f32
    %7 = vector.broadcast %cst_5 : f32 to vector<8x1024xf32>
    %8 = arith.maximumf %6, %7 : vector<8x1024xf32>
    %9 = arith.truncf %8 : vector<8x1024xf32> to vector<8x1024xbf16>
    %c0_6 = arith.constant 0 : index
    %c0_7 = arith.constant 0 : index
    %10 = vector.load %arg4[%c0_6, %c0_7] : memref<1024x128xbf16, #tpu.memory_space<vmem>>, vector<1024x128xbf16>
    %cst_8 = arith.constant dense<0.000000e+00> : vector<8x128xf32>
    %11 = tpu.matmul %9, %10, %cst_8 {dimension_numbers = #tpu.dot_dimension_numbers<[1], [0], [0], [1], [0, 0, 1, 1], [], []>} : vector<8x1024xbf16>, vector<1024x128xbf16>, vector<8x128xf32> -> vector<8x128xf32>
    %c0_9 = arith.constant 0 : index
    %c0_10 = arith.constant 0 : index
    %12 = vector.load %arg5[%c0_9, %c0_10] : memref<1x128xf32, #tpu.memory_space<vmem>>, vector<1x128xf32>
    %13 = vector.broadcast %12 : vector<1x128xf32> to vector<8x128xf32>
    %14 = arith.addf %11, %13 : vector<8x128xf32>
    %cst_11 = arith.constant dense<0xFF800000> : vector<8xf32>
    %15 = vector.multi_reduction <maximumf>, %14, %cst_11 [1] : vector<8x128xf32> to vector<8xf32>
    %16 = vector.shape_cast %15 : vector<8xf32> to vector<8x1xf32>
    %17 = vector.broadcast %16 : vector<8x1xf32> to vector<8x128xf32>
    %18 = arith.subf %14, %17 : vector<8x128xf32>
    %19 = math.exp %18 : vector<8x128xf32>
    %cst_12 = arith.constant dense<0.000000e+00> : vector<8xf32>
    %20 = vector.multi_reduction <add>, %19, %cst_12 [1] : vector<8x128xf32> to vector<8xf32>
    %21 = vector.shape_cast %20 : vector<8xf32> to vector<8x1xf32>
    %22 = math.log %21 : vector<8x1xf32>
    %23 = vector.broadcast %22 : vector<8x1xf32> to vector<8x128xf32>
    %24 = arith.subf %18, %23 : vector<8x128xf32>
    %c0_13 = arith.constant 0 : index
    %c0_14 = arith.constant 0 : index
    %25 = vector.load %arg6[%c0_13, %c0_14] : memref<8x128xf32, #tpu.memory_space<vmem>>, vector<8x128xf32>
    tpu.vector_store %arg6[%c0_13, %c0_14], %24 {strides = array<i32>} : memref<8x128xf32, #tpu.memory_space<vmem>>, vector<8x128xf32>,
    return
  }
  func.func @transform_0(%arg0: i32) -> (i32, i32) {
    %c0_i32 = arith.constant 0 : i32
    %c0_i32_0 = arith.constant 0 : i32
    return %arg0, %c0_i32 : i32, i32
  }
  func.func @transform_1(%arg0: i32) -> (i32, i32) {
    %c0_i32 = arith.constant 0 : i32
    %c0_i32_0 = arith.constant 0 : i32
    %c0_i32_1 = arith.constant 0 : i32
    return %c0_i32, %c0_i32_0 : i32, i32
  }
  func.func @transform_2(%arg0: i32) -> (i32, i32) {
    %c0_i32 = arith.constant 0 : i32
    %c0_i32_0 = arith.constant 0 : i32
    %c0_i32_1 = arith.constant 0 : i32
    return %c0_i32, %c0_i32_0 : i32, i32
  }
  func.func @transform_3(%arg0: i32) -> (i32, i32) {
    %c0_i32 = arith.constant 0 : i32
    %c0_i32_0 = arith.constant 0 : i32
    %c0_i32_1 = arith.constant 0 : i32
    return %c0_i32, %c0_i32_0 : i32, i32
  }
  func.func @transform_4(%arg0: i32) -> (i32, i32) {
    %c0_i32 = arith.constant 0 : i32
    %c0_i32_0 = arith.constant 0 : i32
    %c0_i32_1 = arith.constant 0 : i32
    return %c0_i32, %c0_i32_0 : i32, i32
  }
  func.func @transform_5(%arg0: i32) -> (i32, i32) {
    %c0_i32 = arith.constant 0 : i32
    %c0_i32_0 = arith.constant 0 : i32
    return %arg0, %c0_i32 : i32, i32
  }
}

</mosaic_0001>

<bundles_post_ra>
// kernel: tpu_custom_call.1
= control target key start
LH: loop header
LB: loop body
LE: loop exit
PB: predicated region body
PF: predicated region fallthrough
CT: control target
= control target key end

     0   :  { %10 = vsyncpa [#allocation3], 0  ;;  %s1661_s0 = inlined_call_operand.hbm [shape: f32[8,64], index: 0, kind: input, shape index: {}]   ;;  %s1662_s1 = inlined_call_operand.hbm [shape: bf16[64,1024], index: 1, kind: input, shape index: {}]   ;;  %s1663_s2 = inlined_call_operand.hbm [shape: f32[1,1024], index: 2, kind: input, shape index: {}]   ;;  %s1664_s3 = inlined_call_operand.hbm [shape: bf16[1024,128], index: 3, kind: input, shape index: {}]   ;;  %s1665_s4 = inlined_call_operand.vmem [shape: f32[1,128], index: 4, kind: input, shape index: {}]   ;;  %s1666_s5 = inlined_call_operand.hbm [shape: f32[8,128], index: 5, kind: output, shape index: {}]  }
   0x1   :  { %11 = vsyncpa [#allocation6], 0 }
   0x2   :  { %12 = vsyncpa [#allocation9], 0 }
   0x3   :  { %13 = vsyncpa [#allocation4], 0  ;;  %s1575_s18 = smov [#allocation5]  }
   0x4   :  { %s29_s19 = sshll.u32 %s1575_s18, 4  ;;  %s30_s19 = int_to_ptr.vmem [resolvable:$true] %s29_s19 }
   0x5   :  { %s1475_s20 = scalar_lea.vmem %s30_s19, 4096  ;;  %p1480_p1 = scmp.lt.s32.totalorder %s30_s19, %s30_s19 }
   0x6   :  { %p1476_p0 = scmp.ne.s32.totalorder %s30_s19, %s1475_s20  ;;  %p1481_p2 = scmp.lt.s32.totalorder %s1475_s20, %s1475_s20 }
   0x8   :  { %p1482_p3 = por %p1481_p2, %p1480_p1 }
   0xa   :  { %p1483_p4 = pnand %p1482_p3, %p1476_p0 }
   0xc   :  { %1486 = shalt.err (!%p1483_p4)
}
   0xd   :  { %s1576_s21 = smov 512   ;;  %s1577_s22 = smov 32  }
   0xe   :  { %35 = dma.hbm_to_vmem [thread:$0]  %s1662_s1, 4096, %s30_s19, [#allocation6], %s1576_s21, %s1576_s21, %s1577_s22  }
   0xf   :  { %s1578_s25 = smov [#allocation2]   ;;  %s1579_s27 = smov [#allocation7]  }
  0x10   :  { %s20_s26 = sshll.u32 %s1578_s25, 4  ;;  %s42_s28 = sshll.u32 %s1579_s27, 4  ;;  %s21_s26 = int_to_ptr.vmem [resolvable:$true] %s20_s26  ;;  %s43_s28 = int_to_ptr.vmem [resolvable:$true] %s42_s28 }
  0x11   :  { %s1495_s29 = scalar_lea.vmem %s21_s26, 128  ;;  %p1500_p6 = scmp.lt.s32.totalorder %s21_s26, %s21_s26 }
  0x12   :  { %p1496_p5 = scmp.ne.s32.totalorder %s21_s26, %s1495_s29  ;;  %p1501_p7 = scmp.lt.s32.totalorder %s1495_s29, %s1495_s29 }
  0x14   :  { %p1502_p8 = por %p1501_p7, %p1500_p6 }
  0x16   :  { %p1503_p9 = pnand %p1502_p8, %p1496_p5 }
  0x18   :  { %1506 = shalt.err (!%p1503_p9)
}
  0x19   :  { %23 = dma.hbm_to_vmem [thread:$0]  %s1661_s0, 128, %s21_s26, [#allocation3]  }
  0x1a   :  { %s1515_s7 = scalar_lea.vmem %s43_s28, 128  ;;  %p1520_p11 = scmp.lt.s32.totalorder %s43_s28, %s43_s28 }
  0x1b   :  { %p1516_p10 = scmp.ne.s32.totalorder %s43_s28, %s1515_s7  ;;  %p1521_p12 = scmp.lt.s32.totalorder %s1515_s7, %s1515_s7 }
  0x1d   :  { %p1522_p13 = por %p1521_p12, %p1520_p11 }
  0x1f   :  { %p1523_p0 = pnand %p1522_p13, %p1516_p10 }
  0x21   :  { %1526 = shalt.err (!%p1523_p0)
}
  0x22   :  { %45 = dma.hbm_to_vmem [thread:$0]  %s1663_s2, 128, %s43_s28, [#allocation6]  }
  0x23   :  { %s1580_s9 = smov [#allocation8]  }
  0x24   :  { %s51_s10 = sshll.u32 %s1580_s9, 4  ;;  %s52_s10 = int_to_ptr.vmem [resolvable:$true] %s51_s10 }
  0x25   :  { %s1535_s11 = scalar_lea.vmem %s52_s10, 8192  ;;  %p1540_p2 = scmp.lt.s32.totalorder %s52_s10, %s52_s10 }
  0x26   :  { %p1536_p1 = scmp.ne.s32.totalorder %s52_s10, %s1535_s11  ;;  %p1541_p3 = scmp.lt.s32.totalorder %s1535_s11, %s1535_s11 }
  0x28   :  { %p1542_p4 = por %p1541_p3, %p1540_p2 }
  0x2a   :  { %p1543_p5 = pnand %p1542_p4, %p1536_p1 }
  0x2c   :  { %1546 = shalt.err (!%p1543_p5)
}
  0x2d   :  { %s1581_s0 = smov 64   ;;  %s1582_s12 = smov 4  }
  0x2e   :  { %57 = dma.hbm_to_vmem [thread:$0]  %s1664_s3, 8192, %s52_s10, [#allocation9], %s1581_s0, %s1581_s0, %s1582_s12  }
  0x2f   :  { %1567 = dma.done.wait [#allocation3], 128  }
  0x30   :  { %1568 = vsyncadd [#allocation3], 4294967168 }
  0x31   :  { %1569 = dma.done.wait [#allocation6], 4224  }
  0x32   :  { %1570 = vsyncadd [#allocation6], 4294963072 }
  0x33   :  { %1571 = dma.done.wait [#allocation9], 8192  }
  0x34   :  { %1572 = vsyncadd [#allocation9], 4294959104  ;;  %v1583_v0 = vmov 0   ;;  %v99_v1 = vld [vmem:[#allocation5 + $0xc0] sm:$0xff]  ;;  %v100_v3 = vld [vmem:[#allocation5 + $0xc8] sm:$0xff]  ;;  %vm309_vm0 = vcmask 523264  }
  0x35   :  { %345 = vmatprep.mubr.bf16.mxu0 %v1583_v0  ;;  %386 = vmatprep.mubr.bf16.mxu1 %v1583_v0  ;;  %v103_v2 = vld [vmem:[#allocation5 + $0xe0] sm:$0xff]  ;;  %v104_v5 = vld [vmem:[#allocation5 + $0xe8] sm:$0xff]  ;;  %v73_v31 = vld [vmem:[#allocation2] sm:$0xff] }
  0x36   :  { %v1225_v4 = vcombine.high %v99_v1, %v103_v2  ;;  %v1224_v6 = vcombine.low %v99_v1, %v103_v2  ;;  %v91_v7 = vld [vmem:[#allocation5 + $0x80] sm:$0xff]  ;;  %v1227_v9 = vcombine.high %v100_v3, %v104_v5  ;;  %v1226_v10 = vcombine.low %v100_v3, %v104_v5  ;;  %v92_v12 = vld [vmem:[#allocation5 + $0x88] sm:$0xff]  ;;  %v101_v32 = vld [vmem:[#allocation5 + $0xd0] sm:$0xff] }
  0x37   :  { %v95_v8 = vld [vmem:[#allocation5 + $0xa0] sm:$0xff]  ;;  %v96_v13 = vld [vmem:[#allocation5 + $0xa8] sm:$0xff]  ;;  %v105_v33 = vld [vmem:[#allocation5 + $0xf0] sm:$0xff]  ;;  %v74_v43 = vpack.c.bf16 %v73_v31, %v73_v31 }
  0x38   :  { %v1217_v11 = vcombine.high %v91_v7, %v95_v8  ;;  %v83_v14 = vld [vmem:[#allocation5 + $0x40] sm:$0xff]  ;;  %321 = vmatprep.subr.bf16.mxu0 %v1225_v4  ;;  %v1219_v15 = vcombine.high %v92_v12, %v96_v13  ;;  %v84_v17 = vld [vmem:[#allocation5 + $0x48] sm:$0xff]  ;;  %362 = vmatprep.subr.bf16.mxu1 %v1227_v9  ;;  %v1216_v19 = vcombine.low %v91_v7, %v95_v8  ;;  %v102_v34 = vld [vmem:[#allocation5 + $0xd8] sm:$0xff] }
  0x39   :  { %v87_v16 = vld [vmem:[#allocation5 + $0x60] sm:$0xff]  ;;  %v88_v18 = vld [vmem:[#allocation5 + $0x68] sm:$0xff]  ;;  %322 = vmatpush1.bf16.msra.mxu0 %v1224_v6  ;;  %363 = vmatpush1.bf16.msra.mxu1 %v1226_v10  ;;  %v1218_v20 = vcombine.low %v92_v12, %v96_v13  ;;  %v106_v35 = vld [vmem:[#allocation5 + $0xf8] sm:$0xff]  ;;  %v1229_v39 = vcombine.high %v101_v32, %v105_v33  ;;  %v1228_v45 = vcombine.low %v101_v32, %v105_v33 }
  0x3a   :  { %323 = vmatprep.subr.bf16.mxu0 %v1217_v11  ;;  %v1209_v21 = vcombine.high %v83_v14, %v87_v16  ;;  %364 = vmatprep.subr.bf16.mxu1 %v1219_v15  ;;  %v1211_v22 = vcombine.high %v84_v17, %v88_v18  ;;  %v75_v23 = vld [vmem:[#allocation5] sm:$0xff]  ;;  %v76_v25 = vld [vmem:[#allocation5 + $0x8] sm:$0xff]  ;;  %v1208_v27 = vcombine.low %v83_v14, %v87_v16  ;;  %v93_v37 = vld [vmem:[#allocation5 + $0x90] sm:$0xff] }
  0x3b   :  { %v79_v24 = vld [vmem:[#allocation5 + $0x20] sm:$0xff]  ;;  %v80_v26 = vld [vmem:[#allocation5 + $0x28] sm:$0xff]  ;;  %v1210_v28 = vcombine.low %v84_v17, %v88_v18  ;;  %v97_v40 = vld [vmem:[#allocation5 + $0xb0] sm:$0xff]  ;;  %v1231_v41 = vcombine.high %v102_v34, %v106_v35  ;;  %v1230_v47 = vcombine.low %v102_v34, %v106_v35 }
  0x3c   :  { %v1201_v29 = vcombine.high %v75_v23, %v79_v24  ;;  %v1203_v30 = vcombine.high %v76_v25, %v80_v26  ;;  %v1200_v36 = vcombine.low %v75_v23, %v79_v24  ;;  %v1202_v38 = vcombine.low %v76_v25, %v80_v26  ;;  %v94_v42 = vld [vmem:[#allocation5 + $0x98] sm:$0xff]  ;;  %v85_v46 = vld [vmem:[#allocation5 + $0x50] sm:$0xff]  ;;  %v1399_v3 = vld [vmem:[#allocation8 + $0x78] sm:$0xff]  }
  0x3d   :  { %324 = vmatpush1.bf16.msra.mxu0 %v1216_v19  ;;  %365 = vmatpush1.bf16.msra.mxu1 %v1218_v20  ;;  %v98_v44 = vld [vmem:[#allocation5 + $0xb8] sm:$0xff]  ;;  %v1221_v48 = vcombine.high %v93_v37, %v97_v40  ;;  %v89_v49 = vld [vmem:[#allocation5 + $0x70] sm:$0xff]  ;;  %v1220_v53 = vcombine.low %v93_v37, %v97_v40  ;;  %v1400_v5 = vld [vmem:[#allocation8 + $0xf8] sm:$0xff]   ;;  %v109_v37 = vlaneseq }
  0x3e   :  { %325 = vmatprep.subr.bf16.mxu0 %v1209_v21  ;;  %366 = vmatprep.subr.bf16.mxu1 %v1211_v22  ;;  %v1223_v50 = vcombine.high %v94_v42, %v98_v44  ;;  %v86_v51 = vld [vmem:[#allocation5 + $0x58] sm:$0xff]  ;;  %v77_v54 = vld [vmem:[#allocation5 + $0x10] sm:$0xff]  ;;  %v1222_v55 = vcombine.low %v94_v42, %v98_v44  ;;  %v1213_v56 = vcombine.high %v85_v46, %v89_v49  ;;  %v1401_v6 = vld [vmem:[#allocation8 + $0x38] sm:$0xff]  }
  0x3f   :  { %v90_v52 = vld [vmem:[#allocation5 + $0x78] sm:$0xff]  ;;  %v81_v57 = vld [vmem:[#allocation5 + $0x30] sm:$0xff]  ;;  %v1212_v61 = vcombine.low %v85_v46, %v89_v49  ;;  %v1402_v7 = vld [vmem:[#allocation8 + $0xb8] sm:$0xff]  }
  0x40   :  { %v1215_v58 = vcombine.high %v86_v51, %v90_v52  ;;  %v78_v59 = vld [vmem:[#allocation5 + $0x18] sm:$0xff]  ;;  %v1214_v62 = vcombine.low %v86_v51, %v90_v52  ;;  %v1205_v63 = vcombine.high %v77_v54, %v81_v57  ;;  %v1204_v2 = vcombine.low %v77_v54, %v81_v57  ;;  %v1407_v11 = vld [vmem:[#allocation8 + $0x68] sm:$0xff]   ;;  %v1411_v15 = vld [vmem:[#allocation8 + $0x60] sm:$0xff]  }
  0x41   :  { %326 = vmatpush1.bf16.msra.mxu0 %v1208_v27  ;;  %367 = vmatpush1.bf16.msra.mxu1 %v1210_v28  ;;  %v82_v60 = vld [vmem:[#allocation5 + $0x38] sm:$0xff]  ;;  %v1408_v12 = vld [vmem:[#allocation8 + $0xe8] sm:$0xff]   ;;  %v1412_v16 = vld [vmem:[#allocation8 + $0xe0] sm:$0xff]  }
  0x42   :  { %327 = vmatprep.subr.bf16.mxu0 %v1201_v29  ;;  %368 = vmatprep.subr.bf16.mxu1 %v1203_v30  ;;  %v1207_v1 = vcombine.high %v78_v59, %v82_v60  ;;  %v1206_v4 = vcombine.low %v78_v59, %v82_v60  ;;  %v1404_v8 = vld [vmem:[#allocation8 + $0xf0] sm:$0xff]   ;;  %v1409_v13 = vld [vmem:[#allocation8 + $0x28] sm:$0xff]   ;;  %v1413_v17 = vld [vmem:[#allocation8 + $0x20] sm:$0xff]  }
  0x43   :  { %v1405_v9 = vld [vmem:[#allocation8 + $0x30] sm:$0xff]   ;;  %v1410_v14 = vld [vmem:[#allocation8 + $0xa8] sm:$0xff]   ;;  %v1414_v18 = vld [vmem:[#allocation8 + $0xa0] sm:$0xff]  }
  0x44   :  { %v1406_v10 = vld [vmem:[#allocation8 + $0xb0] sm:$0xff]   ;;  %v1415_v19 = vld [vmem:[#allocation8 + $0x58] sm:$0xff]   ;;  %v1423_v27 = vld [vmem:[#allocation8 + $0x48] sm:$0xff]  }
  0x45   :  { %328 = vmatpush1.bf16.msra.mxu0 %v1200_v36  ;;  %369 = vmatpush1.bf16.msra.mxu1 %v1202_v38  ;;  %v1416_v20 = vld [vmem:[#allocation8 + $0xd8] sm:$0xff]   ;;  %v1419_v23 = vld [vmem:[#allocation8 + $0x50] sm:$0xff]   ;;  %v1424_v28 = vld [vmem:[#allocation8 + $0xc8] sm:$0xff]   ;;  %v1635_v38 = vshrl.u32 %v109_v37, 7 }
  0x46   :  { %403 = vmatprep.subr.bf16.mxu0 %v1229_v39  ;;  %444 = vmatprep.subr.bf16.mxu1 %v1231_v41  ;;  %v1417_v21 = vld [vmem:[#allocation8 + $0x18] sm:$0xff]   ;;  %v1420_v24 = vld [vmem:[#allocation8 + $0xd0] sm:$0xff]   ;;  %v1425_v29 = vld [vmem:[#allocation8 + $0x8] sm:$0xff]  }
  0x47   :  { %v1418_v22 = vld [vmem:[#allocation8 + $0x98] sm:$0xff]   ;;  %v1421_v25 = vld [vmem:[#allocation8 + $0x10] sm:$0xff]   ;;  %v1426_v30 = vld [vmem:[#allocation8 + $0x88] sm:$0xff]   ;;  %v111_v39 = vsub.s32 0, %v1635_v38  ;;  %v119_v41 = vsub.s32 2, %v1635_v38  ;;  %v115_v42 = vsub.s32 1, %v1635_v38 }
  0x48   :  { %1232 = vmatmul.mubr.msk.bf16.vlgmr.msra.gmra.mxu0 %vm309_vm0, %v74_v43  ;;  %1233 = vmatmul.mubr.msk.bf16.vlgmr.msra.gmra.mxu1 %vm309_vm0, %v74_v43  ;;  %v1422_v26 = vld [vmem:[#allocation8 + $0x90] sm:$0xff]   ;;  %v1427_v31 = vld [vmem:[#allocation8 + $0x40] sm:$0xff]   ;;  %v1431_v35 = vld [vmem:[#allocation8 + $0x178] sm:$0xff]   ;;  %v135_v37 = vsub.s32 6, %v1635_v38 }
  0x49   :  { %404 = vmatpush1.bf16.msra.mxu0 %v1228_v45  ;;  %445 = vmatpush1.bf16.msra.mxu1 %v1230_v47  ;;  %v1428_v32 = vld [vmem:[#allocation8 + $0xc0] sm:$0xff]   ;;  %v1432_v36 = vld [vmem:[#allocation8 + $0x1f8] sm:$0xff]  }
  0x4a   :  { %405 = vmatprep.subr.bf16.mxu0 %v1221_v48  ;;  %446 = vmatprep.subr.bf16.mxu1 %v1223_v50  ;;  %v1429_v33 = vld [vmem:[#allocation8] sm:$0xff]   ;;  %v1638_v40 = vld [vmem:[#allocation7] sm:$0xff] }
  0x4b   :  { %427 = vmatprep.mubr.bf16.mxu0 %v1583_v0  ;;  %468 = vmatprep.mubr.bf16.mxu1 %v1583_v0  ;;  %v1403_v0 = vld [vmem:[#allocation8 + $0x70] sm:$0xff]   ;;  %v1430_v34 = vld [vmem:[#allocation8 + $0x80] sm:$0xff]   ;;  %v112_v44 = vrot.slane %v1638_v40, %v111_v39  ;;  %v120_v45 = vrot.slane %v1638_v40, %v119_v41  ;;  %v116_v46 = vrot.slane %v1638_v40, %v115_v42  ;;  %v127_v41 = vsub.s32 4, %v1635_v38  ;;  %v1450_v42 = vld [vmem:[#allocation8 + $0x198] sm:$0xff]  }
  0x4d   :  { %406 = vmatpush1.bf16.msra.mxu0 %v1220_v53  ;;  %447 = vmatpush1.bf16.msra.mxu1 %v1222_v55 }
  0x4e   :  { %407 = vmatprep.subr.bf16.mxu0 %v1213_v56  ;;  %448 = vmatprep.subr.bf16.mxu1 %v1215_v58 }
  0x51   :  { %408 = vmatpush1.bf16.msra.mxu0 %v1212_v61  ;;  %449 = vmatpush1.bf16.msra.mxu1 %v1214_v62 }
  0x52   :  { %409 = vmatprep.subr.bf16.mxu0 %v1205_v63  ;;  %450 = vmatprep.subr.bf16.mxu1 %v1207_v1 }
  0x55   :  { %410 = vmatpush1.bf16.msra.mxu0 %v1204_v2  ;;  %451 = vmatpush1.bf16.msra.mxu1 %v1206_v4 }
  0x56   :  { %1301 = vmatprep.subr.bf16.mxu0 %v1399_v3  ;;  %1323 = vmatprep.subr.bf16.mxu1 %v1400_v5  ;;  %v1433_v3 = vld [vmem:[#allocation8 + $0x138] sm:$0xff]  }
  0x58   :  { %1234 = vmatmul.mubr.msk.bf16.vlgmr.msra.gmra.mxu0 %vm309_vm0, %v74_v43  ;;  %1235 = vmatmul.mubr.msk.bf16.vlgmr.msra.gmra.mxu1 %vm309_vm0, %v74_v43  ;;  %v123_v43 = vsub.s32 3, %v1635_v38 }
  0x59   :  { %1302 = vmatpush3.bf16.msra.mxu0 %v1401_v6  ;;  %1324 = vmatpush3.bf16.msra.mxu1 %v1402_v7  ;;  %v1434_v6 = vld [vmem:[#allocation8 + $0x1b8] sm:$0xff]   ;;  %v1435_v7 = vld [vmem:[#allocation8 + $0x170] sm:$0xff]  }
  0x5a   :  { %1303 = vmatprep.subr.bf16.mxu0 %v1403_v0  ;;  %1325 = vmatprep.subr.bf16.mxu1 %v1404_v8  ;;  %v124_v48 = vrot.slane %v1638_v40, %v123_v43  ;;  %v1436_v0 = vld [vmem:[#allocation8 + $0x1f0] sm:$0xff]  }
  0x5b   :  { %v1437_v8 = vld [vmem:[#allocation8 + $0x130] sm:$0xff]  }
  0x5d   :  { %1304 = vmatpush3.bf16.msra.mxu0 %v1405_v9  ;;  %1326 = vmatpush3.bf16.msra.mxu1 %v1406_v10  ;;  %v131_v9 = vsub.s32 5, %v1635_v38  ;;  %v1438_v10 = vld [vmem:[#allocation8 + $0x1b0] sm:$0xff]  }
  0x5e   :  { %1305 = vmatprep.subr.bf16.mxu0 %v1407_v11  ;;  %1327 = vmatprep.subr.bf16.mxu1 %v1408_v12  ;;  %v1439_v11 = vld [vmem:[#allocation8 + $0x168] sm:$0xff]   ;;  %v139_v12 = vsub.s32 7, %v1635_v38 }
  0x5f   :  { %v1456_v38 = vld [vmem:[#allocation8 + $0x1c8] sm:$0xff]  }
  0x61   :  { %1306 = vmatpush3.bf16.msra.mxu0 %v1409_v13  ;;  %1328 = vmatpush3.bf16.msra.mxu1 %v1410_v14  ;;  %v1440_v13 = vld [vmem:[#allocation8 + $0x1e8] sm:$0xff]  }
  0x62   :  { %1307 = vmatprep.subr.bf16.mxu0 %v1411_v15  ;;  %1329 = vmatprep.subr.bf16.mxu1 %v1412_v16  ;;  %v1441_v14 = vld [vmem:[#allocation8 + $0x128] sm:$0xff]   ;;  %v132_v15 = vrot.slane %v1638_v40, %v131_v9 }
  0x63   :  { %v1442_v16 = vld [vmem:[#allocation8 + $0x1a8] sm:$0xff]  }
  0x65   :  { %1308 = vmatpush3.bf16.msra.mxu0 %v1413_v17  ;;  %1330 = vmatpush3.bf16.msra.mxu1 %v1414_v18  ;;  %v1443_v17 = vld [vmem:[#allocation8 + $0x160] sm:$0xff]  }
  0x66   :  { %1309 = vmatprep.subr.bf16.mxu0 %v1415_v19  ;;  %1331 = vmatprep.subr.bf16.mxu1 %v1416_v20  ;;  %v140_v19 = vrot.slane %v1638_v40, %v139_v12  ;;  %v1444_v20 = vld [vmem:[#allocation8 + $0x1e0] sm:$0xff]  }
  0x69   :  { %1310 = vmatpush3.bf16.msra.mxu0 %v1417_v21  ;;  %1332 = vmatpush3.bf16.msra.mxu1 %v1418_v22 }
  0x6a   :  { %1311 = vmatprep.subr.bf16.mxu0 %v1419_v23  ;;  %1333 = vmatprep.subr.bf16.mxu1 %v1420_v24  ;;  %v1445_v23 = vld [vmem:[#allocation8 + $0x120] sm:$0xff]  }
  0x6d   :  { %1312 = vmatpush3.bf16.msra.mxu0 %v1421_v25  ;;  %1334 = vmatpush3.bf16.msra.mxu1 %v1422_v26  ;;  %v1446_v26 = vld [vmem:[#allocation8 + $0x1a0] sm:$0xff]  }
  0x6e   :  { %1313 = vmatprep.subr.bf16.mxu0 %v1423_v27  ;;  %1335 = vmatprep.subr.bf16.mxu1 %v1424_v28  ;;  %v1447_v27 = vld [vmem:[#allocation8 + $0x158] sm:$0xff]  }
  0x71   :  { %1314 = vmatpush3.bf16.msra.mxu0 %v1425_v29  ;;  %1336 = vmatpush3.bf16.msra.mxu1 %v1426_v30  ;;  %v1448_v30 = vld [vmem:[#allocation8 + $0x1d8] sm:$0xff]  }
  0x72   :  { %1315 = vmatprep.subr.bf16.mxu0 %v1427_v31  ;;  %1337 = vmatprep.subr.bf16.mxu1 %v1428_v32 }
  0x75   :  { %1316 = vmatpush3.bf16.msra.mxu0 %v1429_v33  ;;  %1338 = vmatpush3.bf16.msra.mxu1 %v1430_v34 }
  0x76   :  { %1345 = vmatprep.subr.bf16.mxu0 %v1431_v35  ;;  %1367 = vmatprep.subr.bf16.mxu1 %v1432_v36  ;;  %v1449_v35 = vld [vmem:[#allocation8 + $0x118] sm:$0xff]  }
 0x108   :  { %v347_v47 = vpop.f32.mrf.mxu0  ;;  %v388_v50 = vpop.f32.mrf.mxu1 }
 0x109   :  { %v348_v49 = vadd.f32 %v347_v47, %v112_v44  ;;  %v389_v51 = vadd.f32 %v388_v50, %v120_v45  ;;  %v1451_v44 = vld [vmem:[#allocation8 + $0x150] sm:$0xff]   ;;  %v1455_v50 = vld [vmem:[#allocation8 + $0x148] sm:$0xff]  }
 0x10a   :  { %v349_v52 = vpop.f32.mrf.mxu0  ;;  %v390_v54 = vpop.f32.mrf.mxu1  ;;  %v1452_v45 = vld [vmem:[#allocation8 + $0x1d0] sm:$0xff]  }
 0x10b   :  { %v350_v53 = vadd.f32 %v349_v52, %v116_v46  ;;  %v477_v55 = vmax.f32 %v348_v49, 0.0  ;;  %v479_v56 = vmax.f32 %v389_v51, 0.0  ;;  %v391_v57 = vadd.f32 %v390_v54, %v124_v48  ;;  %v1453_v47 = vld [vmem:[#allocation8 + $0x110] sm:$0xff]   ;;  %v1457_v52 = vld [vmem:[#allocation8 + $0x108] sm:$0xff]  }
 0x10c   :  { %v351_v58 = vpop.f32.mrf.mxu0  ;;  %v392_v60 = vpop.f32.mrf.mxu1  ;;  %v136_v46 = vrot.slane %v1638_v40, %v135_v37  ;;  %v128_v48 = vrot.slane %v1638_v40, %v127_v41  ;;  %v1454_v49 = vld [vmem:[#allocation8 + $0x190] sm:$0xff]   ;;  %v1458_v54 = vld [vmem:[#allocation8 + $0x188] sm:$0xff]  }
 0x10d   :  { %v478_v59 = vmax.f32 %v350_v53, 0.0  ;;  %v480_v61 = vmax.f32 %v391_v57, 0.0  ;;  %v487_v63 = vpack.c.bf16 %v479_v56, %v479_v56  ;;  %v485_v4 = vpack.c.bf16 %v477_v55, %v477_v55  ;;  %v1459_v55 = vld [vmem:[#allocation8 + $0x140] sm:$0xff]  }
 0x10e   :  { %v352_v62 = vpop.f32.mrf.mxu0  ;;  %v393_v2 = vpop.f32.mrf.mxu1  ;;  %v1460_v56 = vld [vmem:[#allocation8 + $0x1c0] sm:$0xff]  }
 0x10f   :  { %v486_v1 = vpack.c.bf16 %v478_v59, %v478_v59  ;;  %v488_v5 = vpack.c.bf16 %v480_v61, %v480_v61  ;;  %v1461_v58 = vld [vmem:[#allocation8 + $0x100] sm:$0xff]  }
 0x110   :  { %v1462_v59 = vld [vmem:[#allocation8 + $0x180] sm:$0xff]  }
 0x111   :  { %1044 = vmatprep.mubr.bf16.mxu0 %v486_v1  ;;  %1084 = vmatprep.mubr.bf16.mxu1 %v488_v5 }
 0x112   :  { %1045 = vmatmul.mubr.bf16.vlgmr.msra.gmra.mxu0 %v485_v4  ;;  %1085 = vmatmul.mubr.bf16.vlgmr.msra.gmra.mxu1 %v487_v63 }
 0x113   :  { %1346 = vmatpush3.bf16.msra.mxu0 %v1433_v3  ;;  %1368 = vmatpush3.bf16.msra.mxu1 %v1434_v6 }
 0x114   :  { %1347 = vmatprep.subr.bf16.mxu0 %v1435_v7  ;;  %1369 = vmatprep.subr.bf16.mxu1 %v1436_v0  ;;  %v1236_v0 = vld [vmem:[%s1665_s4] ss:$0 sm:$0xff]  ;;  %s1584_s4 = smov [#allocation10]  }
 0x115   :  { %s1189_s15 = sshll.u32 %s1584_s4, 4  ;;  %s1190_s15 = int_to_ptr.vmem [resolvable:$true] %s1189_s15 }
 0x116   :  { %s1547_s16 = scalar_lea.vmem %s1190_s15, 128  ;;  %p1552_p7 = scmp.lt.s32.totalorder %s1190_s15, %s1190_s15 }
 0x117   :  { %1348 = vmatpush3.bf16.msra.mxu0 %v1437_v8  ;;  %1370 = vmatpush3.bf16.msra.mxu1 %v1438_v10  ;;  %p1548_p6 = scmp.ne.s32.totalorder %s1190_s15, %s1547_s16  ;;  %p1553_p8 = scmp.lt.s32.totalorder %s1547_s16, %s1547_s16 }
 0x118   :  { %1349 = vmatprep.subr.bf16.mxu0 %v1439_v11  ;;  %v429_v18 = vpop.f32.mrf.mxu0  ;;  %1371 = vmatprep.subr.bf16.mxu1 %v1440_v13  ;;  %v470_v21 = vpop.f32.mrf.mxu1 }
 0x119   :  { %v471_v51 = vadd.f32 %v470_v21, %v136_v46  ;;  %v430_v53 = vadd.f32 %v429_v18, %v128_v48  ;;  %p1554_p9 = por %p1553_p8, %p1552_p7 }
 0x11a   :  { %v431_v22 = vpop.f32.mrf.mxu0  ;;  %v472_v25 = vpop.f32.mrf.mxu1 }
 0x11b   :  { %1350 = vmatpush3.bf16.msra.mxu0 %v1441_v14  ;;  %v432_v24 = vadd.f32 %v431_v22, %v132_v15  ;;  %1372 = vmatpush3.bf16.msra.mxu1 %v1442_v16  ;;  %v473_v29 = vadd.f32 %v472_v25, %v140_v19  ;;  %v483_v57 = vmax.f32 %v471_v51, 0.0  ;;  %v481_v40 = vmax.f32 %v430_v53, 0.0  ;;  %p1555_p10 = pnand %p1554_p9, %p1548_p6 }
 0x11c   :  { %1351 = vmatprep.subr.bf16.mxu0 %v1443_v17  ;;  %v433_v28 = vpop.f32.mrf.mxu0  ;;  %1373 = vmatprep.subr.bf16.mxu1 %v1444_v20  ;;  %v474_v32 = vpop.f32.mrf.mxu1 }
 0x11d   :  { %v482_v31 = vmax.f32 %v432_v24, 0.0  ;;  %v484_v33 = vmax.f32 %v473_v29, 0.0  ;;  %v491_v60 = vpack.c.bf16 %v483_v57, %v483_v57  ;;  %v489_v61 = vpack.c.bf16 %v481_v40, %v481_v40 }
 0x11e   :  { %v434_v34 = vpop.f32.mrf.mxu0  ;;  %v475_v39 = vpop.f32.mrf.mxu1 }
 0x11f   :  { %1352 = vmatpush3.bf16.msra.mxu0 %v1445_v23  ;;  %v490_v36 = vpack.c.bf16 %v482_v31, %v482_v31  ;;  %1374 = vmatpush3.bf16.msra.mxu1 %v1446_v26  ;;  %v492_v43 = vpack.c.bf16 %v484_v33, %v484_v33 }
 0x120   :  { %1353 = vmatprep.subr.bf16.mxu0 %v1447_v27  ;;  %1375 = vmatprep.subr.bf16.mxu1 %v1448_v30 }
 0x121   :  { %1124 = vmatprep.mubr.bf16.mxu0 %v490_v36  ;;  %1164 = vmatprep.mubr.bf16.mxu1 %v492_v43 }
 0x123   :  { %1354 = vmatpush3.bf16.msra.mxu0 %v1449_v35  ;;  %1376 = vmatpush3.bf16.msra.mxu1 %v1450_v42 }
 0x124   :  { %1355 = vmatprep.subr.bf16.mxu0 %v1451_v44  ;;  %1377 = vmatprep.subr.bf16.mxu1 %v1452_v45 }
 0x127   :  { %1356 = vmatpush3.bf16.msra.mxu0 %v1453_v47  ;;  %1378 = vmatpush3.bf16.msra.mxu1 %v1454_v49 }
 0x128   :  { %1357 = vmatprep.subr.bf16.mxu0 %v1455_v50  ;;  %1379 = vmatprep.subr.bf16.mxu1 %v1456_v38 }
 0x12b   :  { %1358 = vmatpush3.bf16.msra.mxu0 %v1457_v52  ;;  %1380 = vmatpush3.bf16.msra.mxu1 %v1458_v54 }
 0x12c   :  { %1359 = vmatprep.subr.bf16.mxu0 %v1459_v55  ;;  %1381 = vmatprep.subr.bf16.mxu1 %v1460_v56 }
 0x12f   :  { %1360 = vmatpush3.bf16.msra.mxu0 %v1461_v58  ;;  %1382 = vmatpush3.bf16.msra.mxu1 %v1462_v59 }
 0x132   :  { %1125 = vmatmul.mubr.bf16.vlgmr.msra.gmra.mxu0 %v489_v61  ;;  %1165 = vmatmul.mubr.bf16.vlgmr.msra.gmra.mxu1 %v491_v60 }
 0x1d2   :  { %v1317_v62 = vpop.f32.mrf.mxu0  ;;  %v1339_v63 = vpop.f32.mrf.mxu1 }
 0x1d4   :  { %v1318_v1 = vpop.f32.mrf.mxu0  ;;  %v1340_v2 = vpop.f32.mrf.mxu1 }
 0x1d5   :  { %v1319_v7 = vadd.f32 %v1318_v1, %v1317_v62  ;;  %v1341_v10 = vadd.f32 %v1340_v2, %v1339_v63 }
 0x1d6   :  { %v1320_v3 = vpop.f32.mrf.mxu0  ;;  %v1342_v4 = vpop.f32.mrf.mxu1 }
 0x1d7   :  { %v1047_v8 = vadd.f32 %v1319_v7, %v1236_v0 }
 0x1d8   :  { %v1321_v5 = vpop.f32.mrf.mxu0  ;;  %v1343_v6 = vpop.f32.mrf.mxu1 }
 0x1d9   :  { %v1087_v13 = vadd.f32 %v1341_v10, %v1047_v8 }
 0x1f2   :  { %v1361_v9 = vpop.f32.mrf.mxu0  ;;  %v1383_v11 = vpop.f32.mrf.mxu1 }
 0x1f4   :  { %v1362_v12 = vpop.f32.mrf.mxu0  ;;  %v1384_v15 = vpop.f32.mrf.mxu1 }
 0x1f5   :  { %v1363_v14 = vadd.f32 %v1362_v12, %v1361_v9  ;;  %v1385_v18 = vadd.f32 %v1384_v15, %v1383_v11 }
 0x1f6   :  { %v1364_v16 = vpop.f32.mrf.mxu0  ;;  %v1386_v19 = vpop.f32.mrf.mxu1 }
 0x1f7   :  { %v1127_v17 = vadd.f32 %v1363_v14, %v1087_v13 }
 0x1f8   :  { %v1365_v20 = vpop.f32.mrf.mxu0  ;;  %v1387_v21 = vpop.f32.mrf.mxu1 }
 0x1f9   :  { %v1167_v22 = vadd.f32 %v1385_v18, %v1127_v17 }
 0x1fb   :  { %1172 = vmax.xlane.f32.xlu0 %v1167_v22 }
 0x284   :  { %v1173_v23 = vpop.xlane.xlu0 %1172 }
 0x285   :  { %v1174_v24 = vsub.f32 %v1167_v22, %v1173_v23 }
 0x287   :  { %v1175_v25 = vmul.f32 1.442695, %v1174_v24 }
 0x289   :  { %1463 = vpow2.f32 %v1175_v25 }
 0x296   :  { %v1464_v26 = vpop.eup %1463 }
 0x297   :  { %1177 = vadd.xlane.f32.xlu0 %v1464_v26 }
 0x320   :  { %v1178_v27 = vpop.xlane.xlu0 %1177 }
 0x321   :  { %1465 = vlog2.f32 %v1178_v27 }
 0x32e   :  { %v1466_v28 = vpop.eup %1465 }
 0x32f   :  { %v1180_v29 = vmul.f32 0.6931472, %v1466_v28 }
 0x331   :  { %v1181_v30 = vsub.f32 %v1174_v24, %v1180_v29 }
 0x333   :  { %1182 = vst [vmem:[#allocation10] sm:$0xff] %v1181_v30 }
 0x334   :  { %1558 = shalt.err (!%p1555_p10)
}
 0x335   :  { %1192 = dma.vmem_to_hbm [thread:$0]  %s1190_s15, 128, %s1666_s5, [#allocation4]  }
 0x336   :  { %1573 = dma.done.wait [#allocation4], 128  }
 0x337   :  { %1574 = vsyncadd [#allocation4], 4294967168 }
 0x338   :  { %1196 = vsyncpa [#allocation3], 1 }
 0x339   :  { %1197 = vsyncpa [#allocation6], 1 }
 0x33a   :  { %1198 = vsyncpa [#allocation9], 1 }
 0x33b   :  { %1199 = vsyncpa [#allocation4], 1 }

</bundles_post_ra>
